<compile_context>
chip_gen: v7x
topology: tpu7x:2x2x1
jax: 0.10.0
libtpu: 0.0.40
codegen_flags: <defaults>
</compile_context>

<pallas_src>
import functools

import jax
import jax.numpy as jnp
from jax.experimental import pallas as pl
from jax.experimental.pallas import tpu as pltpu


def _round_up(n, m):
    return (n + m - 1) // m * m


def _choose_tile_b(batch, *, max_tile=1024, min_tile=128, target_steps=8):
    """Pick the batch tile: large enough to amortize the ~0.35us per-step
    overhead (256->1024 rows moves a mem-bound kernel from ~63% to ~86% of HBM
    roofline), small enough to keep ~target_steps grid steps in flight for
    pipelining and dual-TC sharding on v7x."""
    full = _round_up(batch, 8)
    if full <= 2 * min_tile:
        return min(full, max_tile)          # small batch: one (possibly partial) tile
    tb = _round_up(pl.cdiv(batch, target_steps), 8)
    return max(min_tile, min(tb, max_tile))


def _neuralnet_kernel(x_ref, w1_ref, b1_ref, w2_ref, b2_ref, bn_ref, o_ref,
                      *, eps2, eps3):
    # ---- fc1 + ReLU -------------------------------------------------------
    x = x_ref[...].astype(jnp.float32)                        # x.float()
    h = jnp.dot(x, w1_ref[...], preferred_element_type=jnp.float32) + b1_ref[...]
    h = jnp.maximum(h, 0.0)                                    # ReLU

    # ---- batchnorm2(out.t()): per-row norm over hidden dim, eps=hidden_size.
    # Single-pass stats: mu = s1/H, var = s2/H - mu^2 (biased, training-mode).
    inv_h = 1.0 / h.shape[1]
    s1 = jnp.sum(h, axis=1, keepdims=True)
    s2 = jnp.sum(h * h, axis=1, keepdims=True)
    mu2 = s1 * inv_h
    var2 = s2 * inv_h - mu2 * mu2
    hn = (h - mu2) * (jax.lax.rsqrt(var2 + eps2) * bn_ref[0]) + bn_ref[1]

    # ---- fc2 (no lane padding needed; logits last dim == true num_classes) --
    logits = jnp.dot(hn, w2_ref[...], preferred_element_type=jnp.float32) + b2_ref[...]

    # ---- batchnorm3(out.t()): per-row norm over the class dim, eps=num_classes.
    inv_c = 1.0 / logits.shape[1]
    t1 = jnp.sum(logits, axis=1, keepdims=True)
    t2 = jnp.sum(logits * logits, axis=1, keepdims=True)
    mu3 = t1 * inv_c
    var3 = t2 * inv_c - mu3 * mu3
    ln = (logits - mu3) * (jax.lax.rsqrt(var3 + eps3) * bn_ref[2]) + bn_ref[3]

    # ---- softmax(dim=1) ------------------------------------------------------
    m = jnp.max(ln, axis=1, keepdims=True)
    e = jnp.exp(ln - m)
    denom = jnp.sum(e, axis=1, keepdims=True)
    o_ref[...] = e * pl.reciprocal(denom, approx=True)


def neuralnet_forward(x, w1_t, b1, w2_t, b2, bn_params):
    """x: (B, input_size). w1_t: (input_size, H), w2_t: (H, C) (pre-transposed,
    float32). b1: (1, H), b2: (1, C). bn_params: (4,) = [gamma2, beta2, gamma3,
    beta3]. Returns (B, C) softmax probabilities (float32)."""
    B, in_size = x.shape
    H = w1_t.shape[1]
    C = w2_t.shape[1]
    eps2 = float(H)   # nn.BatchNorm1d(1, hidden_size)  -> eps = hidden_size
    eps3 = float(C)   # nn.BatchNorm1d(1, num_classes)  -> eps = num_classes

    tb = _choose_tile_b(B)
    grid = (pl.cdiv(B, tb),)   # partial last tile handled by Pallas (no jnp.pad)

    kernel = functools.partial(_neuralnet_kernel, eps2=eps2, eps3=eps3)

    out = pl.pallas_call(
        kernel,
        out_shape=jax.ShapeDtypeStruct((B, C), jnp.float32),
        grid=grid,
        in_specs=[
            pl.BlockSpec((tb, in_size), lambda i: (i, 0)),       # x: streamed per tile
            pl.BlockSpec((in_size, H), lambda i: (0, 0)),        # w1: VMEM-resident
            pl.BlockSpec((1, H),       lambda i: (0, 0)),        # b1: VMEM-resident
            pl.BlockSpec((H, C),       lambda i: (0, 0)),        # w2: VMEM-resident
            pl.BlockSpec((1, C),       lambda i: (0, 0)),        # b2: VMEM-resident
            pl.BlockSpec(memory_space=pltpu.MemorySpace.SMEM),   # bn scalars
        ],
        out_specs=pl.BlockSpec((tb, C), lambda i: (i, 0)),       # native (tb, C) store
        compiler_params=pltpu.CompilerParams(
            dimension_semantics=("parallel",)),                  # v7x dual-TC sharding
    )(x, w1_t, b1, w2_t, b2, bn_params)

    return out


def _reference_forward(x, w1_t, b1, w2_t, b2, bn_params, eps2, eps3):
    """Pure-JAX reference for correctness checking."""
    x = x.astype(jnp.float32)
    h = jnp.maximum(x @ w1_t + b1, 0.0)
    mu2 = h.mean(axis=1, keepdims=True)
    var2 = ((h - mu2) ** 2).mean(axis=1, keepdims=True)
    hn = (h - mu2) / jnp.sqrt(var2 + eps2) * bn_params[0] + bn_params[1]
    logits = hn @ w2_t + b2
    mu3 = logits.mean(axis=1, keepdims=True)
    var3 = ((logits - mu3) ** 2).mean(axis=1, keepdims=True)
    ln = (logits - mu3) / jnp.sqrt(var3 + eps3) * bn_params[2] + bn_params[3]
    return jax.nn.softmax(ln, axis=1)


if __name__ == "__main__":
    INPUT_SIZE, HIDDEN_SIZE, NUM_CLASSES = 64, 32, 10

    key = jax.random.PRNGKey(0)
    k_x, k_w1, k_b1, k_w2, k_b2 = jax.random.split(key, 5)

    # Deterministic parameter init (PyTorch-Linear-style uniform bounds).
    bound1 = 1.0 / (INPUT_SIZE ** 0.5)
    w1 = jax.random.uniform(k_w1, (HIDDEN_SIZE, INPUT_SIZE), jnp.float32,
                            -bound1, bound1)
    b1 = jax.random.uniform(k_b1, (HIDDEN_SIZE,), jnp.float32, -bound1, bound1)
    bound2 = 1.0 / (HIDDEN_SIZE ** 0.5)
    w2 = jax.random.uniform(k_w2, (NUM_CLASSES, HIDDEN_SIZE), jnp.float32,
                            -bound2, bound2)
    b2 = jax.random.uniform(k_b2, (NUM_CLASSES,), jnp.float32, -bound2, bound2)

    # BatchNorm affine params (default init: weight=1, bias=0).
    bn_params = jnp.array([1.0, 0.0, 1.0, 0.0], dtype=jnp.float32)

    # Glue: parameter prep done ONCE (pre-transposed, f32, 2-D bias rows) so the
    # per-call hot path is a single pallas_call with no extra XLA ops.
    w1_t = jnp.asarray(w1.T, jnp.float32)                 # (INPUT_SIZE, HIDDEN_SIZE)
    w2_t = jnp.asarray(w2.T, jnp.float32)                 # (HIDDEN_SIZE, NUM_CLASSES)
    b1_r = jnp.asarray(b1.reshape(1, HIDDEN_SIZE), jnp.float32)
    b2_r = jnp.asarray(b2.reshape(1, NUM_CLASSES), jnp.float32)

    fwd = jax.jit(neuralnet_forward)

    ok = True
    # B=1:   the only batch size the PyTorch module itself accepts (bit-faithful path).
    # B=300: non-multiple of the tile -> exercises the partial boundary tile (no pad).
    # B=512: exercises the multi-step batch grid, resident weights, parallel semantics.
    for B in (1, 300, 512):
        x = jax.random.normal(jax.random.fold_in(k_x, B), (B, INPUT_SIZE),
                              dtype=jnp.float32)
        out = jax.block_until_ready(fwd(x, w1_t, b1_r, w2_t, b2_r, bn_params))
        ref = _reference_forward(x, w1_t, b1_r, w2_t, b2_r, bn_params,
                                 float(HIDDEN_SIZE), float(NUM_CLASSES))
        ok &= out.shape == (B, NUM_CLASSES)
        ok &= bool(jnp.allclose(out, ref, atol=3e-3, rtol=3e-3))
        ok &= bool(jnp.allclose(out.sum(axis=1), 1.0, atol=5e-3))

    assert ok
    print("KERNEL_OK")
</pallas_src>

<mosaic_0001>
module attributes {stable_mosaic.version = 11 : i64} {
  func.func @_neuralnet_kernel(%arg0: i32, %arg1: memref<8x64xf32, #tpu.memory_space<vmem>>, %arg2: memref<64x32xf32, #tpu.memory_space<vmem>>, %arg3: memref<1x32xf32, #tpu.memory_space<vmem>>, %arg4: memref<32x10xf32, #tpu.memory_space<vmem>>, %arg5: memref<1x10xf32, #tpu.memory_space<vmem>>, %arg6: memref<4xf32, #tpu.memory_space<smem>>, %arg7: memref<8x10xf32, #tpu.memory_space<vmem>>) attributes {dimension_semantics = [#tpu.dimension_semantics<parallel>], iteration_bounds = array<i64: 1>, scalar_prefetch = 0 : i64, scratch_operands = 0 : i64, tpu.core_type = #tpu.core_type<tc>, window_params = [{transform_indices = @transform_0, window_bounds = array<i64: 8, 64>}, {pipeline_mode = #tpu.pipeline_mode<synchronous>, transform_indices = @transform_1, window_bounds = array<i64: 64, 32>}, {pipeline_mode = #tpu.pipeline_mode<synchronous>, transform_indices = @transform_2, window_bounds = array<i64: 1, 32>}, {pipeline_mode = #tpu.pipeline_mode<synchronous>, transform_indices = @transform_3, window_bounds = array<i64: 32, 10>}, {pipeline_mode = #tpu.pipeline_mode<synchronous>, transform_indices = @transform_4, window_bounds = array<i64: 1, 10>}, {transform_indices = @transform_5, window_bounds = array<i64: 4>}, {transform_indices = @transform_6, window_bounds = array<i64: 8, 10>}]} {
    %c0 = arith.constant 0 : index
    %c0_0 = arith.constant 0 : index
    %0 = vector.load %arg1[%c0, %c0_0] : memref<8x64xf32, #tpu.memory_space<vmem>>, vector<8x64xf32>
    %c0_1 = arith.constant 0 : index
    %c0_2 = arith.constant 0 : index
    %1 = vector.load %arg2[%c0_1, %c0_2] : memref<64x32xf32, #tpu.memory_space<vmem>>, vector<64x32xf32>
    %cst = arith.constant dense<0.000000e+00> : vector<8x32xf32>
    %2 = tpu.matmul %0, %1, %cst {dimension_numbers = #tpu.dot_dimension_numbers<[1], [0], [0], [1], [0, 0, 1, 1], [], []>} : vector<8x64xf32>, vector<64x32xf32>, vector<8x32xf32> -> vector<8x32xf32>
    %c0_3 = arith.constant 0 : index
    %c0_4 = arith.constant 0 : index
    %3 = vector.load %arg3[%c0_3, %c0_4] : memref<1x32xf32, #tpu.memory_space<vmem>>, vector<1x32xf32>
    %4 = vector.broadcast %3 : vector<1x32xf32> to vector<8x32xf32>
    %5 = arith.addf %2, %4 : vector<8x32xf32>
    %cst_5 = arith.constant 0.000000e+00 : f32
    %6 = vector.broadcast %cst_5 : f32 to vector<8x32xf32>
    %7 = arith.maximumf %5, %6 : vector<8x32xf32>
    %cst_6 = arith.constant dense<0.000000e+00> : vector<8xf32>
    %8 = vector.multi_reduction <add>, %7, %cst_6 [1] : vector<8x32xf32> to vector<8xf32>
    %9 = vector.shape_cast %8 : vector<8xf32> to vector<8x1xf32>
    %10 = arith.mulf %7, %7 : vector<8x32xf32>
    %cst_7 = arith.constant dense<0.000000e+00> : vector<8xf32>
    %11 = vector.multi_reduction <add>, %10, %cst_7 [1] : vector<8x32xf32> to vector<8xf32>
    %12 = vector.shape_cast %11 : vector<8xf32> to vector<8x1xf32>
    %cst_8 = arith.constant 3.125000e-02 : f32
    %13 = vector.broadcast %cst_8 : f32 to vector<8x1xf32>
    %14 = arith.mulf %9, %13 : vector<8x1xf32>
    %cst_9 = arith.constant 3.125000e-02 : f32
    %15 = vector.broadcast %cst_9 : f32 to vector<8x1xf32>
    %16 = arith.mulf %12, %15 : vector<8x1xf32>
    %17 = arith.mulf %14, %14 : vector<8x1xf32>
    %18 = arith.subf %16, %17 : vector<8x1xf32>
    %19 = vector.broadcast %14 : vector<8x1xf32> to vector<8x32xf32>
    %20 = arith.subf %7, %19 : vector<8x32xf32>
    %cst_10 = arith.constant 3.200000e+01 : f32
    %21 = vector.broadcast %cst_10 : f32 to vector<8x1xf32>
    %22 = arith.addf %18, %21 : vector<8x1xf32>
    %23 = math.rsqrt %22 : vector<8x1xf32>
    %c0_11 = arith.constant 0 : index
    %24 = memref.load %arg6[%c0_11] : memref<4xf32, #tpu.memory_space<smem>>
    %25 = vector.broadcast %24 : f32 to vector<8x1xf32>
    %26 = arith.mulf %23, %25 : vector<8x1xf32>
    %27 = vector.broadcast %26 : vector<8x1xf32> to vector<8x32xf32>
    %28 = arith.mulf %20, %27 : vector<8x32xf32>
    %c1 = arith.constant 1 : index
    %29 = memref.load %arg6[%c1] : memref<4xf32, #tpu.memory_space<smem>>
    %30 = vector.broadcast %29 : f32 to vector<8x32xf32>
    %31 = arith.addf %28, %30 : vector<8x32xf32>
    %c0_12 = arith.constant 0 : index
    %c0_13 = arith.constant 0 : index
    %32 = vector.load %arg4[%c0_12, %c0_13] : memref<32x10xf32, #tpu.memory_space<vmem>>, vector<32x10xf32>
    %cst_14 = arith.constant dense<0.000000e+00> : vector<8x10xf32>
    %33 = tpu.matmul %31, %32, %cst_14 {dimension_numbers = #tpu.dot_dimension_numbers<[1], [0], [0], [1], [0, 0, 1, 1], [], []>} : vector<8x32xf32>, vector<32x10xf32>, vector<8x10xf32> -> vector<8x10xf32>
    %c0_15 = arith.constant 0 : index
    %c0_16 = arith.constant 0 : index
    %34 = vector.load %arg5[%c0_15, %c0_16] : memref<1x10xf32, #tpu.memory_space<vmem>>, vector<1x10xf32>
    %35 = vector.broadcast %34 : vector<1x10xf32> to vector<8x10xf32>
    %36 = arith.addf %33, %35 : vector<8x10xf32>
    %cst_17 = arith.constant dense<0.000000e+00> : vector<8xf32>
    %37 = vector.multi_reduction <add>, %36, %cst_17 [1] : vector<8x10xf32> to vector<8xf32>
    %38 = vector.shape_cast %37 : vector<8xf32> to vector<8x1xf32>
    %39 = arith.mulf %36, %36 : vector<8x10xf32>
    %cst_18 = arith.constant dense<0.000000e+00> : vector<8xf32>
    %40 = vector.multi_reduction <add>, %39, %cst_18 [1] : vector<8x10xf32> to vector<8xf32>
    %41 = vector.shape_cast %40 : vector<8xf32> to vector<8x1xf32>
    %cst_19 = arith.constant 1.000000e-01 : f32
    %42 = vector.broadcast %cst_19 : f32 to vector<8x1xf32>
    %43 = arith.mulf %38, %42 : vector<8x1xf32>
    %cst_20 = arith.constant 1.000000e-01 : f32
    %44 = vector.broadcast %cst_20 : f32 to vector<8x1xf32>
    %45 = arith.mulf %41, %44 : vector<8x1xf32>
    %46 = arith.mulf %43, %43 : vector<8x1xf32>
    %47 = arith.subf %45, %46 : vector<8x1xf32>
    %48 = vector.broadcast %43 : vector<8x1xf32> to vector<8x10xf32>
    %49 = arith.subf %36, %48 : vector<8x10xf32>
    %cst_21 = arith.constant 1.000000e+01 : f32
    %50 = vector.broadcast %cst_21 : f32 to vector<8x1xf32>
    %51 = arith.addf %47, %50 : vector<8x1xf32>
    %52 = math.rsqrt %51 : vector<8x1xf32>
    %c2 = arith.constant 2 : index
    %53 = memref.load %arg6[%c2] : memref<4xf32, #tpu.memory_space<smem>>
    %54 = vector.broadcast %53 : f32 to vector<8x1xf32>
    %55 = arith.mulf %52, %54 : vector<8x1xf32>
    %56 = vector.broadcast %55 : vector<8x1xf32> to vector<8x10xf32>
    %57 = arith.mulf %49, %56 : vector<8x10xf32>
    %c3 = arith.constant 3 : index
    %58 = memref.load %arg6[%c3] : memref<4xf32, #tpu.memory_space<smem>>
    %59 = vector.broadcast %58 : f32 to vector<8x10xf32>
    %60 = arith.addf %57, %59 : vector<8x10xf32>
    %cst_22 = arith.constant dense<0xFF800000> : vector<8xf32>
    %61 = vector.multi_reduction <maximumf>, %60, %cst_22 [1] : vector<8x10xf32> to vector<8xf32>
    %62 = vector.shape_cast %61 : vector<8xf32> to vector<8x1xf32>
    %63 = vector.broadcast %62 : vector<8x1xf32> to vector<8x10xf32>
    %64 = arith.subf %60, %63 : vector<8x10xf32>
    %65 = math.exp %64 : vector<8x10xf32>
    %cst_23 = arith.constant dense<0.000000e+00> : vector<8xf32>
    %66 = vector.multi_reduction <add>, %65, %cst_23 [1] : vector<8x10xf32> to vector<8xf32>
    %67 = vector.shape_cast %66 : vector<8xf32> to vector<8x1xf32>
    %68 = tpu.reciprocal %67 {approx = true} : vector<8x1xf32> -> vector<8x1xf32>
    %69 = vector.broadcast %68 : vector<8x1xf32> to vector<8x10xf32>
    %70 = arith.mulf %65, %69 : vector<8x10xf32>
    %c0_24 = arith.constant 0 : index
    %c0_25 = arith.constant 0 : index
    %71 = vector.load %arg7[%c0_24, %c0_25] : memref<8x10xf32, #tpu.memory_space<vmem>>, vector<8x10xf32>
    tpu.vector_store %arg7[%c0_24, %c0_25], %70 {strides = array<i32>} : memref<8x10xf32, #tpu.memory_space<vmem>>, vector<8x10xf32>,
    return
  }
  func.func @transform_0(%arg0: i32) -> (i32, i32) {
    %c0_i32 = arith.constant 0 : i32
    %c0_i32_0 = arith.constant 0 : i32
    return %arg0, %c0_i32 : i32, i32
  }
  func.func @transform_1(%arg0: i32) -> (i32, i32) {
    %c0_i32 = arith.constant 0 : i32
    %c0_i32_0 = arith.constant 0 : i32
    %c0_i32_1 = arith.constant 0 : i32
    return %c0_i32, %c0_i32_0 : i32, i32
  }
  func.func @transform_2(%arg0: i32) -> (i32, i32) {
    %c0_i32 = arith.constant 0 : i32
    %c0_i32_0 = arith.constant 0 : i32
    %c0_i32_1 = arith.constant 0 : i32
    return %c0_i32, %c0_i32_0 : i32, i32
  }
  func.func @transform_3(%arg0: i32) -> (i32, i32) {
    %c0_i32 = arith.constant 0 : i32
    %c0_i32_0 = arith.constant 0 : i32
    %c0_i32_1 = arith.constant 0 : i32
    return %c0_i32, %c0_i32_0 : i32, i32
  }
  func.func @transform_4(%arg0: i32) -> (i32, i32) {
    %c0_i32 = arith.constant 0 : i32
    %c0_i32_0 = arith.constant 0 : i32
    %c0_i32_1 = arith.constant 0 : i32
    return %c0_i32, %c0_i32_0 : i32, i32
  }
  func.func @transform_5(%arg0: i32) -> i32 {
    %c0_i32 = arith.constant 0 : i32
    %c0_i32_0 = arith.constant 0 : i32
    return %c0_i32 : i32
  }
  func.func @transform_6(%arg0: i32) -> (i32, i32) {
    %c0_i32 = arith.constant 0 : i32
    %c0_i32_0 = arith.constant 0 : i32
    return %arg0, %c0_i32 : i32, i32
  }
}

</mosaic_0001>

<bundles_post_ra>
// kernel: neuralnet_forward.1
= control target key start
LH: loop header
LB: loop body
LE: loop exit
PB: predicated region body
PF: predicated region fallthrough
CT: control target
= control target key end

     0   :  { %11 = vsyncpa [#allocation4], 0  ;;  %s517_s0 = inlined_call_operand.vmem [shape: f32[1,64], index: 0, kind: input, shape index: {}]   ;;  %s518_s1 = inlined_call_operand.vmem [shape: f32[64,32], index: 1, kind: input, shape index: {}]   ;;  %s519_s2 = inlined_call_operand.vmem [shape: f32[1,32], index: 2, kind: input, shape index: {}]   ;;  %s520_s3 = inlined_call_operand.vmem [shape: f32[32,10], index: 3, kind: input, shape index: {}]   ;;  %s521_s4 = inlined_call_operand.vmem [shape: f32[1,10], index: 4, kind: input, shape index: {}]   ;;  %s522_s5 = inlined_call_operand.vmem [shape: f32[4], index: 5, kind: input, shape index: {}]   ;;  %s523_s6 = inlined_call_operand.hbm [shape: f32[1,10], index: 6, kind: output, shape index: {}]  }
   0x1   :  { %12 = vsyncpa [#allocation3], 0  ;;  %s29_s23 = sshll.u32 %s522_s5, 4  ;;  %s30_s23 = int_to_ptr.vmem [resolvable:$true] %s29_s23 }
   0x2   :  { %s369_s24 = scalar_lea.vmem %s30_s23, 16  ;;  %p374_p1 = scmp.lt.s32.totalorder %s30_s23, %s30_s23 }
   0x3   :  { %p370_p0 = scmp.ne.s32.totalorder %s30_s23, %s369_s24  ;;  %p375_p2 = scmp.lt.s32.totalorder %s369_s24, %s369_s24 }
   0x5   :  { %p376_p3 = por %p375_p2, %p374_p1 }
   0x7   :  { %p377_p4 = pnand %p376_p3, %p370_p0 }
   0x9   :  { %380 = shalt.err (!%p377_p4)
}
   0xa   :  { %s407_s25 = smov [#allocation2]  }
   0xb   :  { %32 = dma.vmem_to_smem %s30_s23, 16, %s407_s25, [#allocation4]  }
   0xc   :  { %403 = dma.done.wait [#allocation4], 16  }
   0xd   :  { %404 = vsyncadd [#allocation4], 4294967280 }
   0xe   :  { %36 = sfence }
   0xf   :  { %v38_v0 = vld [vmem:[%s518_s1] sm:$0xff]  ;;  %v39_v1 = vld [vmem:[%s518_s1 + $0x8] sm:$0xff]  ;;  %v40_v2 = vld [vmem:[%s518_s1 + $0x10] sm:$0xff]  ;;  %v408_v3 = vmov 0.0|0.0   ;;  %vm409_vm0 = vmmov 0   ;;  %v410_v6 = vmov 0.0  }
  0x10   :  { %336 = vmatprep.subr.bf16.mxu0 %v408_v3  ;;  %v337_v4 = vpack.c.bf16 %v39_v1, %v38_v0  ;;  %v41_v5 = vld [vmem:[%s518_s1 + $0x18] sm:$0xff]  ;;  %322 = vmatprep.mubr.msk.f32.mxu0 %vm409_vm0, %v410_v6  ;;  %v42_v8 = vld [vmem:[%s518_s1 + $0x20] sm:$0xff]  ;;  %v43_v9 = vld [vmem:[%s518_s1 + $0x28] sm:$0xff]  ;;  %vm53_vm1 = vcmask 523264   ;;  %vm128_vm2 = vcmask 261120   ;;  %s143_s26 = sld [smem:[#allocation2]] }
  0x11   :  { %348 = vmatprep.subr.bf16.mxu1 %v408_v3  ;;  %333 = vmatprep.mubr.msk.f32.mxu1 %vm409_vm0, %v410_v6  ;;  %v340_v7 = vpack.c.bf16 %v41_v5, %v40_v2  ;;  %v343_v10 = vpack.c.bf16 %v43_v9, %v42_v8  ;;  %v44_v11 = vld [vmem:[%s518_s1 + $0x30] sm:$0xff]  ;;  %v45_v12 = vld [vmem:[%s518_s1 + $0x38] sm:$0xff]  ;;  %v37_v14 = vld [vmem:[%s517_s0] sm:$0xff]  ;;  %s287_s27 = sld [smem:[#allocation2 + $0x1]]  ;;  %vm234_vm3 = vcmask 80896   ;;  %s291_s29 = sld [smem:[#allocation2 + $0x3]] }
  0x12   :  { %338 = vmatpush3.bf16.msra.mxu0 %v337_v4  ;;  %v346_v13 = vpack.c.bf16 %v45_v12, %v44_v11  ;;  %v285_v15 = vld [vmem:[%s519_s2] ss:$0 sm:$0xff]  ;;  %v151_v24 = vld [vmem:[%s520_s3 + $0x8] sm:$0xff]  ;;  %v152_v25 = vld [vmem:[%s520_s3 + $0x10] sm:$0xff] }
  0x13   :  { %339 = vmatprep.subr.bf16.mxu0 %v408_v3  ;;  %v150_v23 = vld [vmem:[%s520_s3] sm:$0xff]  ;;  %v153_v27 = vld [vmem:[%s520_s3 + $0x18] sm:$0xff] }
  0x14   :  { %v349_v26 = vpack.c.bf16 %v151_v24, %v150_v23  ;;  %v352_v28 = vpack.c.bf16 %v153_v27, %v152_v25  ;;  %v288_v43 = vld [vmem:[%s521_s4] ss:$0 sm:$0xff]  ;;  %s290_s4 = sld [smem:[#allocation2 + $0x2]] }
  0x16   :  { %341 = vmatpush3.bf16.msra.mxu0 %v340_v7  ;;  %350 = vmatpush3.bf16.msra.mxu1 %v349_v26  ;;  %v144_v36 = vstv %s143_s26 }
  0x17   :  { %342 = vmatprep.subr.bf16.mxu0 %v408_v3  ;;  %351 = vmatprep.subr.bf16.mxu1 %v408_v3  ;;  %v148_v40 = vstv %s287_s27  ;;  %v254_v61 = vstv %s291_s29 }
  0x1a   :  { %344 = vmatpush3.bf16.msra.mxu0 %v343_v10  ;;  %353 = vmatpush3.bf16.msra.mxu1 %v352_v28  ;;  %v250_v57 = vstv %s290_s4 }
  0x1b   :  { %345 = vmatprep.subr.bf16.mxu0 %v408_v3 }
  0x1e   :  { %347 = vmatpush3.bf16.msra.mxu0 %v346_v13 }
  0x21   :  { %323 = vmatmul.mubr.msk.f32.vlgmr.msra.gmra.mrb[0].mxu0 %vm53_vm1, %v37_v14 }
  0xf4   :  { %v123_v16 = vpop.f32.mrb[0].mxu0 }
  0xf5   :  { %v124_v17 = vadd.f32 %v285_v15, %v123_v16  ;;  %v324_v18 = vpop.f32.mrb[1].mxu0 }
  0xf7   :  { %v127_v19 = vmax.f32 %v124_v17, 0.0 }
  0xf9   :  { %v129_v20 = vsel %vm128_vm2, %v127_v19, 0.0  ;;  %v132_v21 = vmul.f32 %v127_v19, %v127_v19 }
  0xfa   :  { %130 = vadd.xlane.f32.xlu0 %v129_v20 }
  0xfb   :  { %v133_v22 = vsel %vm128_vm2, %v132_v21, 0.0 }
  0xfe   :  { %134 = vadd.xlane.f32.xlu0 %v133_v22 }
 0x187   :  { %v131_v29 = vpop.xlane.xlu0 %130 }
 0x188   :  { %v136_v30 = vmul.f32 0.03125, %v131_v29 }
 0x18a   :  { %v138_v32 = vmul.f32 %v136_v30, %v136_v30  ;;  %v140_v38 = vsub.f32 %v127_v19, %v136_v30 }
 0x18b   :  { %v135_v31 = vpop.xlane.xlu0 %134 }
 0x18c   :  { %v137_v33 = vmul.f32 0.03125, %v135_v31 }
 0x18e   :  { %v139_v34 = vsub.f32 %v137_v33, %v138_v32 }
 0x190   :  { %v141_v35 = vadd.f32 32.0, %v139_v34 }
 0x192   :  { %361 = vrsqrt.f32 %v141_v35 }
 0x19c   :  { %v362_v37 = vpop.eup %361 }
 0x19d   :  { %v145_v39 = vmul.f32 %v362_v37, %v144_v36 }
 0x19f   :  { %v146_v41 = vmul.f32 %v145_v39, %v140_v38 }
 0x1a1   :  { %v149_v42 = vadd.f32 %v148_v40, %v146_v41 }
 0x1a3   :  { %334 = vmatmul.mubr.msk.f32.vlgmr.msra.gmra.mrb[0].mxu1 %vm128_vm2, %v149_v42 }
 0x276   :  { %v230_v44 = vpop.f32.mrb[0].mxu1 }
 0x277   :  { %v231_v45 = vadd.f32 %v288_v43, %v230_v44  ;;  %v335_v46 = vpop.f32.mrb[1].mxu1 }
 0x279   :  { %v235_v47 = vsel %vm234_vm3, %v231_v45, 0.0  ;;  %v238_v48 = vmul.f32 %v231_v45, %v231_v45 }
 0x27a   :  { %236 = vadd.xlane.f32.xlu1 %v235_v47 }
 0x27b   :  { %v239_v49 = vsel %vm234_vm3, %v238_v48, 0.0 }
 0x27e   :  { %240 = vadd.xlane.f32.xlu1 %v239_v49 }
 0x307   :  { %v237_v50 = vpop.xlane.xlu1 %236 }
 0x308   :  { %v242_v51 = vmul.f32 0.1, %v237_v50 }
 0x30a   :  { %v244_v53 = vmul.f32 %v242_v51, %v242_v51  ;;  %v246_v59 = vsub.f32 %v231_v45, %v242_v51 }
 0x30b   :  { %v241_v52 = vpop.xlane.xlu1 %240 }
 0x30c   :  { %v243_v54 = vmul.f32 0.1, %v241_v52 }
 0x30e   :  { %v245_v55 = vsub.f32 %v243_v54, %v244_v53 }
 0x310   :  { %v247_v56 = vadd.f32 10.0, %v245_v55 }
 0x312   :  { %363 = vrsqrt.f32 %v247_v56 }
 0x31c   :  { %v364_v58 = vpop.eup %363 }
 0x31d   :  { %v251_v60 = vmul.f32 %v364_v58, %v250_v57 }
 0x31f   :  { %v252_v62 = vmul.f32 %v251_v60, %v246_v59 }
 0x321   :  { %v255_v63 = vadd.f32 %v254_v61, %v252_v62 }
 0x323   :  { %v256_v0 = vsel %vm234_vm3, %v255_v63, -inf }
 0x324   :  { %257 = vmax.xlane.f32.xlu0 %v256_v0 }
 0x3b1   :  { %v258_v1 = vpop.xlane.xlu0 %257 }
 0x3b2   :  { %v259_v2 = vsub.f32 %v255_v63, %v258_v1 }
 0x3b4   :  { %v260_v3 = vmul.f32 1.442695, %v259_v2 }
 0x3b6   :  { %365 = vpow2.f32 %v260_v3 }
 0x3c0   :  { %v366_v4 = vpop.eup %365 }
 0x3c1   :  { %v262_v5 = vsel %vm234_vm3, %v366_v4, 0.0 }
 0x3c2   :  { %263 = vadd.xlane.f32.xlu1 %v262_v5 }
 0x44f   :  { %v264_v6 = vpop.xlane.xlu1 %263 }
 0x450   :  { %367 = vrcp.f32 %v264_v6 }
 0x45a   :  { %v368_v7 = vpop.eup %367 }
 0x45b   :  { %v266_v8 = vmul.f32 %v368_v7, %v366_v4 }
 0x45d   :  { %267 = vst.msk [vmem:[#allocation5] sm:$0xff] %vm234_vm3, %v266_v8 }
 0x45e   :  { %272 = vsyncadd [#allocation3], 112  ;;  %s411_s5 = smov [#allocation5]  }
 0x45f   :  { %s273_s30 = sshll.u32 %s411_s5, 4  ;;  %s274_s30 = int_to_ptr.vmem [resolvable:$true] %s273_s30 }
 0x460   :  { %s381_s7 = scalar_lea.vmem %s274_s30, 16  ;;  %s385_s8 = scalar_lea.vmem %s274_s30, 128 }
 0x461   :  { %p382_p5 = scmp.ne.s32.totalorder %s274_s30, %s381_s7  ;;  %p386_p6 = scmp.lt.s32.totalorder %s274_s30, %s274_s30 }
 0x462   :  { %p387_p7 = scmp.lt.s32.totalorder %s385_s8, %s381_s7 }
 0x464   :  { %p388_p8 = por %p387_p7, %p386_p6 }
 0x466   :  { %p389_p9 = pnand %p388_p8, %p382_p5 }
 0x468   :  { %392 = shalt.err (!%p389_p9)
}
 0x469   :  { %s393_s11 = scalar_lea.hbm %s523_s6, 16 }
 0x46a   :  { %p394_p10 = scmp.ne.s32.totalorder %s523_s6, %s393_s11  ;;  %p397_p11 = scmp.lt.u32.totalorder %s393_s11, %s523_s6 }
 0x46c   :  { %p399_p12 = pnand %p397_p11, %p394_p10 }
 0x46e   :  { %402 = shalt.err (!%p399_p12)
}
 0x46f   :  { %s412_s16 = smov 16   ;;  %s413_s17 = smov 1  }
 0x470   :  { %279 = dma.vmem_to_hbm [thread:$0]  %s274_s30, 16, %s523_s6, [#allocation3], %s412_s16, %s412_s16, %s413_s17  }
 0x471   :  { %405 = dma.done.wait [#allocation3], 128  }
 0x472   :  { %406 = vsyncadd [#allocation3], 4294967168 }
 0x473   :  { %283 = vsyncpa [#allocation3], 1 }
 0x474   :  { %284 = vsyncpa [#allocation4], 1 }

</bundles_post_ra>
